<compile_context>
chip_gen: v5e
topology: v5e:2x2
jax: 0.10.0
libtpu: 0.0.40
codegen_flags: <defaults>
</compile_context>

<pallas_src>
import functools

import jax
import jax.numpy as jnp
from jax.experimental import pallas as pl
from jax.experimental.pallas import tpu as pltpu

LN_EPS = 1e-5              # nn.LayerNorm default eps
D_MIN, D_MAX = 2.0, 22.0   # rbf() constants from the rfabflex util


# --------------------------------------------------------------------------
# generation-aware VMEM / tile budget
# --------------------------------------------------------------------------
def _vmem_budget():
    try:
        info = pltpu.get_tpu_info()
        vmem = int(getattr(info, "vmem_capacity_bytes", 64 << 20))
    except Exception:
        vmem = 64 << 20
    if vmem >= (100 << 20):                 # v5e / v6e: 128 MiB per TC
        return 6 << 20, 96 * 1024 * 1024
    return 3 << 20, 48 * 1024 * 1024        # v7x: 64 MiB per TC


def _choose_pair_tile(L, d_pair, itemsize, target_bytes):
    """Largest multiple-of-8 row tile keeping one pair tile <= target_bytes."""
    if L * L * d_pair * itemsize <= target_bytes:
        return L
    tile = (target_bytes // (L * d_pair * itemsize)) // 8 * 8
    return int(max(8, min(tile, L)))


# --------------------------------------------------------------------------
# generic row-tiled LayerNorm kernel (used for msa)
# --------------------------------------------------------------------------
def _layernorm_kernel(x_ref, g_ref, b_ref, o_ref):
    x = x_ref[...].astype(jnp.float32)
    mean = jnp.mean(x, axis=-1, keepdims=True)
    var = jnp.mean((x - mean) ** 2, axis=-1, keepdims=True)
    y = (x - mean) * jax.lax.rsqrt(var + LN_EPS)
    o_ref[...] = (y * g_ref[...].astype(jnp.float32)
                  + b_ref[...].astype(jnp.float32)).astype(o_ref.dtype)


def layernorm(x, gamma, beta, *, target_bytes=6 << 20):
    shape = x.shape
    D = shape[-1]
    x2 = x.reshape(-1, D)
    R = x2.shape[0]
    itemsize = jnp.dtype(x.dtype).itemsize
    if R * D * itemsize <= target_bytes:
        tile_r = R                                        # single block, legal
    else:
        tile_r = max(8, min(R, (target_bytes // (D * itemsize)) // 8 * 8))
    grid = (pl.cdiv(R, tile_r),)
    out = pl.pallas_call(
        _layernorm_kernel,
        out_shape=jax.ShapeDtypeStruct((R, D), x.dtype),
        grid=grid,
        in_specs=[
            pl.BlockSpec((tile_r, D), lambda i: (i, 0)),
            pl.BlockSpec((1, D), lambda i: (0, 0)),
            pl.BlockSpec((1, D), lambda i: (0, 0)),
        ],
        out_specs=pl.BlockSpec((tile_r, D), lambda i: (i, 0)),
        compiler_params=pltpu.CompilerParams(dimension_semantics=("parallel",)),
    )(x2, gamma.reshape(1, D), beta.reshape(1, D))
    return out.reshape(shape)


# --------------------------------------------------------------------------
# fused state kernel: LayerNorm(state) + left/right projections (per batch)
#   state_n   = LN(state)
#   left_all  = state_n @ W_left + bias      (B, L, d_pair)
#   right_all = state_n @ W_right            (B, L, d_pair)
# --------------------------------------------------------------------------
def _state_kernel(x_ref, g_ref, b_ref, wl_ref, wr_ref, bias_ref,
                  sn_ref, left_ref, right_ref):
    x = x_ref[0].astype(jnp.float32)                            # (L, d_state)
    mean = jnp.mean(x, axis=-1, keepdims=True)
    var = jnp.mean((x - mean) ** 2, axis=-1, keepdims=True)
    sn = ((x - mean) * jax.lax.rsqrt(var + LN_EPS)
          * g_ref[...].astype(jnp.float32)
          + b_ref[...].astype(jnp.float32))
    sn_ref[0] = sn.astype(sn_ref.dtype)
    left_ref[0] = (jnp.dot(sn, wl_ref[...].astype(jnp.float32),
                           preferred_element_type=jnp.float32)
                   + bias_ref[...].astype(jnp.float32)).astype(left_ref.dtype)
    right_ref[0] = jnp.dot(sn, wr_ref[...].astype(jnp.float32),
                           preferred_element_type=jnp.float32).astype(right_ref.dtype)


# --------------------------------------------------------------------------
# fused pair-update kernel (one (row-tile, batch) block per grid step):
#   pair_out = LayerNorm(pair)
#            + Linear(rbf(cdist(Cb, Cb)))        (bf16 MXU)
#            + left_all[:, None, :] + right_all[None, :, :]
# --------------------------------------------------------------------------
def _recycle_pair_kernel(*refs, inv_sigma, has_mask):
    if has_mask:
        mask_ref, refs = refs[0], refs[1:]
    else:
        mask_ref = None
    (cb_ref, cbt_ref, pair_ref, left_ref, right_ref, mu_s_ref,
     w_rbf_ref, g_ref, b_ref, o_ref) = refs

    tile_i = cb_ref.shape[1]
    L = cbt_ref.shape[2]

    # ---- LayerNorm(pair) on this row tile ----
    pair = pair_ref[0].astype(jnp.float32)                      # (tile_i, L, d_pair)
    mean = jnp.mean(pair, axis=-1, keepdims=True)
    var = jnp.mean((pair - mean) ** 2, axis=-1, keepdims=True)
    pair_n = ((pair - mean) * jax.lax.rsqrt(var + LN_EPS)
              * g_ref[...].astype(jnp.float32)
              + b_ref[...].astype(jnp.float32))

    # ---- pairwise |Cb_i - Cb_j| via direct (a-b)^2 accumulation (VPU) ----
    cb_r = cb_ref[0].astype(jnp.float32)                        # (tile_i, 3)
    cb_c = cbt_ref[0].astype(jnp.float32)                       # (3, L)
    d2 = None
    for a in range(3):
        diff = cb_r[:, a:a + 1] - cb_c[a:a + 1, :]              # (tile_i, L)
        d2 = diff * diff if d2 is None else d2 + diff * diff
    dist_s = jnp.sqrt(d2) * inv_sigma                           # inv_sigma folded once

    # ---- RBF expansion (centers pre-scaled by inv_sigma) ----
    z = dist_s[..., None] - mu_s_ref[...].astype(jnp.float32)   # (tile_i, L, d_rbf)
    rbf_feat = jnp.exp(-(z * z))
    if has_mask:
        rbf_feat = rbf_feat * mask_ref[0][..., None].astype(jnp.float32)

    # ---- proj_dist RBF slice in bf16 on the MXU, f32 accumulation ----
    dist_proj = jax.lax.dot_general(
        rbf_feat.astype(jnp.bfloat16), w_rbf_ref[...],
        dimension_numbers=(((2,), (0,)), ((), ())),
        preferred_element_type=jnp.float32)                     # (tile_i, L, d_pair)

    proj = (dist_proj
            + left_ref[0][:, None, :].astype(jnp.float32)
            + right_ref[0][None, :, :].astype(jnp.float32))
    o_ref[0] = (pair_n + proj).astype(o_ref.dtype)


# --------------------------------------------------------------------------
# glue: virtual Cb from N/CA/C (plain JAX, tiny)
# --------------------------------------------------------------------------
def get_Cb(xyz):                                   # xyz: (B, L, 3, 3)
    N, Ca, C = xyz[:, :, 0], xyz[:, :, 1], xyz[:, :, 2]
    b = Ca - N
    c = C - Ca
    a = jnp.cross(b, c)
    return -0.58273431 * a + 0.56802827 * b - 0.54067466 * c + Ca   # (B, L, 3)


# --------------------------------------------------------------------------
# Recycling.forward
# --------------------------------------------------------------------------
def recycling_forward(params, seq, msa, pair, state, xyz, mask_recycle=None,
                      *, tile_i=None):
    del seq  # unused by the torch module as well
    B, L = pair.shape[0], pair.shape[1]
    d_pair = pair.shape[-1]
    d_state = state.shape[-1]
    d_rbf = params["w_rbf"].shape[0]

    target_bytes, vmem_limit = _vmem_budget()

    # msa LayerNorm (row-tiled, streaming)
    msa_n = layernorm(msa, params["g_msa"], params["b_msa"],
                      target_bytes=target_bytes)

    # fused state LayerNorm + left/right projections (tiny, once per batch)
    state_n, left_all, right_all = pl.pallas_call(
        _state_kernel,
        out_shape=(jax.ShapeDtypeStruct((B, L, d_state), state.dtype),
                   jax.ShapeDtypeStruct((B, L, d_pair), jnp.float32),
                   jax.ShapeDtypeStruct((B, L, d_pair), jnp.float32)),
        grid=(B,),
        in_specs=[
            pl.BlockSpec((1, L, d_state), lambda b: (b, 0, 0)),
            pl.BlockSpec((1, d_state), lambda b: (0, 0)),
            pl.BlockSpec((1, d_state), lambda b: (0, 0)),
            pl.BlockSpec((d_state, d_pair), lambda b: (0, 0)),
            pl.BlockSpec((d_state, d_pair), lambda b: (0, 0)),
            pl.BlockSpec((1, d_pair), lambda b: (0, 0)),
        ],
        out_specs=(pl.BlockSpec((1, L, d_state), lambda b: (b, 0, 0)),
                   pl.BlockSpec((1, L, d_pair), lambda b: (b, 0, 0)),
                   pl.BlockSpec((1, L, d_pair), lambda b: (b, 0, 0))),
        compiler_params=pltpu.CompilerParams(dimension_semantics=("parallel",)),
    )(state,
      params["g_state"].reshape(1, d_state),
      params["b_state"].reshape(1, d_state),
      params["w_left"], params["w_right"],
      params["bias"].reshape(1, d_pair))

    cb = get_Cb(xyz[:, :, :3]).astype(jnp.float32)     # (B, L, 3)
    cbt = jnp.swapaxes(cb, 1, 2)                       # (B, 3, L)

    itemsize = jnp.dtype(pair.dtype).itemsize
    if tile_i is None:
        tile_i = _choose_pair_tile(L, d_pair, itemsize, target_bytes)
    n_tiles = pl.cdiv(L, tile_i)                       # partial last block OK

    inv_sigma = float(d_rbf) / (D_MAX - D_MIN)
    mu_scaled = (jnp.linspace(D_MIN, D_MAX, d_rbf, dtype=jnp.float32)
                 * inv_sigma).reshape(1, d_rbf)

    has_mask = mask_recycle is not None
    kernel = functools.partial(_recycle_pair_kernel,
                               inv_sigma=inv_sigma, has_mask=has_mask)

    in_specs = []
    args = []
    if has_mask:
        mask = mask_recycle
        if not jnp.issubdtype(mask.dtype, jnp.floating):
            mask = mask.astype(jnp.bfloat16)           # no f32 upcast of the stream
        in_specs.append(pl.BlockSpec((1, tile_i, L), lambda i, b: (b, i, 0)))
        args.append(mask)
    in_specs += [
        pl.BlockSpec((1, tile_i, 3), lambda i, b: (b, i, 0)),            # Cb rows
        pl.BlockSpec((1, 3, L), lambda i, b: (b, 0, 0)),                 # Cb cols
        pl.BlockSpec((1, tile_i, L, d_pair), lambda i, b: (b, i, 0, 0)), # pair tile
        pl.BlockSpec((1, tile_i, d_pair), lambda i, b: (b, i, 0)),       # left rows
        pl.BlockSpec((1, L, d_pair), lambda i, b: (b, 0, 0)),            # right full
        pl.BlockSpec((1, d_rbf), lambda i, b: (0, 0)),                   # mu * inv_sigma
        pl.BlockSpec((d_rbf, d_pair), lambda i, b: (0, 0)),              # W[:d_rbf] bf16
        pl.BlockSpec((1, d_pair), lambda i, b: (0, 0)),                  # gamma_pair
        pl.BlockSpec((1, d_pair), lambda i, b: (0, 0)),                  # beta_pair
    ]
    args += [cb, cbt, pair, left_all, right_all, mu_scaled,
             params["w_rbf"].astype(jnp.bfloat16),
             params["g_pair"].reshape(1, d_pair),
             params["b_pair"].reshape(1, d_pair)]

    pair_out = pl.pallas_call(
        kernel,
        out_shape=jax.ShapeDtypeStruct((B, L, L, d_pair), pair.dtype),
        grid=(n_tiles, B),
        in_specs=in_specs,
        out_specs=pl.BlockSpec((1, tile_i, L, d_pair), lambda i, b: (b, i, 0, 0)),
        compiler_params=pltpu.CompilerParams(
            dimension_semantics=("parallel", "parallel"),
            vmem_limit_bytes=vmem_limit),
    )(*args)

    # TODO(synk): pair itself could be kept bf16 end-to-end (LN still in f32
    # in-kernel) for another ~2x HBM-bytes win on v5e if the model allows it.
    return msa_n, pair_out, state_n


# --------------------------------------------------------------------------
# pure-JAX reference (for correctness check)
# --------------------------------------------------------------------------
def reference(params, msa, pair, state, xyz, mask_recycle=None):
    def ln(x, g, b):
        m = jnp.mean(x, -1, keepdims=True)
        v = jnp.mean((x - m) ** 2, -1, keepdims=True)
        return (x - m) / jnp.sqrt(v + LN_EPS) * g + b

    msa_n = ln(msa, params["g_msa"], params["b_msa"])
    pair_n = ln(pair, params["g_pair"], params["b_pair"])
    state_n = ln(state, params["g_state"], params["b_state"])
    B, L = pair.shape[:2]
    d_state = state.shape[-1]
    left = jnp.broadcast_to(state_n[:, :, None, :], (B, L, L, d_state))
    right = jnp.broadcast_to(state_n[:, None, :, :], (B, L, L, d_state))
    cb = get_Cb(xyz[:, :, :3])
    d = jnp.sqrt(jnp.maximum(
        jnp.sum((cb[:, :, None, :] - cb[:, None, :, :]) ** 2, -1), 0.0))
    d_rbf = params["w_rbf"].shape[0]
    mu = jnp.linspace(D_MIN, D_MAX, d_rbf, dtype=jnp.float32)
    sigma = (D_MAX - D_MIN) / d_rbf
    rbf = jnp.exp(-(((d[..., None] - mu) / sigma) ** 2))
    if mask_recycle is not None:
        rbf = mask_recycle[..., None].astype(rbf.dtype) * rbf
    feat = jnp.concatenate([rbf, left, right], axis=-1)
    W = jnp.concatenate([params["w_rbf"], params["w_left"], params["w_right"]], 0)
    dist = feat @ W + params["bias"]
    return msa_n, pair_n + dist, state_n


def _make_inputs(key, B, N_seq, L, d_msa, d_pair, d_state):
    keys = jax.random.split(key, 6)
    msa = jax.random.normal(keys[0], (B, N_seq, L, d_msa), jnp.float32)
    pair = jax.random.normal(keys[1], (B, L, L, d_pair), jnp.float32)
    state = jax.random.normal(keys[2], (B, L, d_state), jnp.float32)
    xyz = 3.0 * jax.random.normal(keys[3], (B, L, 3, 3), jnp.float32)
    mask = (jax.random.uniform(keys[4], (B, L, L)) > 0.3).astype(jnp.float32)
    seq = jnp.zeros((B, L), jnp.int32)
    return seq, msa, pair, state, xyz, mask


if __name__ == "__main__":
    key = jax.random.PRNGKey(0)
    B, N_seq = 2, 2
    d_msa, d_pair, d_state, d_rbf = 64, 128, 32, 64

    # proj_dist: Linear(d_rbf + 2*d_state -> d_pair), lecun-normal weight, zero bias
    kW, kIn = jax.random.split(key)
    d_in = d_rbf + 2 * d_state
    W = jax.random.normal(kW, (d_in, d_pair), jnp.float32) / jnp.sqrt(float(d_in))
    params = dict(
        w_rbf=W[:d_rbf],
        w_left=W[d_rbf:d_rbf + d_state],
        w_right=W[d_rbf + d_state:],
        bias=jnp.zeros((1, d_pair), jnp.float32),
        g_msa=jnp.ones((d_msa,), jnp.float32), b_msa=jnp.zeros((d_msa,), jnp.float32),
        g_pair=jnp.ones((d_pair,), jnp.float32), b_pair=jnp.zeros((d_pair,), jnp.float32),
        g_state=jnp.ones((d_state,), jnp.float32), b_state=jnp.zeros((d_state,), jnp.float32),
    )

    # --- test 1: L=16, tile_i=8 forces the multi-row-tile pipeline, no mask ---
    L = 16
    seq, msa, pair, state, xyz, mask = _make_inputs(kIn, B, N_seq, L,
                                                    d_msa, d_pair, d_state)
    msa_o, pair_o, state_o = recycling_forward(params, seq, msa, pair, state, xyz,
                                               tile_i=8)
    jax.block_until_ready((msa_o, pair_o, state_o))
    msa_r, pair_r, state_r = reference(params, msa, pair, state, xyz)
    assert jnp.allclose(msa_o, msa_r, atol=1e-3, rtol=1e-3)
    assert jnp.allclose(state_o, state_r, atol=1e-3, rtol=1e-3)
    assert jnp.allclose(pair_o, pair_r, atol=1e-2, rtol=1e-2)

    # --- test 2: masked path ---
    _, pair_om, _ = recycling_forward(params, seq, msa, pair, state, xyz,
                                      mask, tile_i=8)
    jax.block_until_ready(pair_om)
    _, pair_rm, _ = reference(params, msa, pair, state, xyz, mask)
    assert jnp.allclose(pair_om, pair_rm, atol=1e-2, rtol=1e-2)

    # --- test 3: L=24 with tile_i=16 exercises the non-divisor (partial) block ---
    L2 = 24
    seq2, msa2, pair2, state2, xyz2, _ = _make_inputs(jax.random.PRNGKey(7), B, N_seq,
                                                      L2, d_msa, d_pair, d_state)
    _, pair_o2, _ = recycling_forward(params, seq2, msa2, pair2, state2, xyz2,
                                      tile_i=16)
    jax.block_until_ready(pair_o2)
    _, pair_r2, _ = reference(params, msa2, pair2, state2, xyz2)
    assert jnp.allclose(pair_o2, pair_r2, atol=1e-2, rtol=1e-2)

    print("KERNEL_OK")
</pallas_src>

<mosaic_0001>
module attributes {stable_mosaic.version = 11 : i64} {
  func.func @_layernorm_kernel(%arg0: i32, %arg1: memref<64x64xf32, #tpu.memory_space<vmem>>, %arg2: memref<1x64xf32, #tpu.memory_space<vmem>>, %arg3: memref<1x64xf32, #tpu.memory_space<vmem>>, %arg4: memref<64x64xf32, #tpu.memory_space<vmem>>) attributes {dimension_semantics = [#tpu.dimension_semantics<parallel>], iteration_bounds = array<i64: 1>, scalar_prefetch = 0 : i64, scratch_operands = 0 : i64, tpu.core_type = #tpu.core_type<tc>, window_params = [{transform_indices = @transform_0, window_bounds = array<i64: 64, 64>}, {pipeline_mode = #tpu.pipeline_mode<synchronous>, transform_indices = @transform_1, window_bounds = array<i64: 1, 64>}, {pipeline_mode = #tpu.pipeline_mode<synchronous>, transform_indices = @transform_2, window_bounds = array<i64: 1, 64>}, {transform_indices = @transform_3, window_bounds = array<i64: 64, 64>}]} {
    %c0 = arith.constant 0 : index
    %c0_0 = arith.constant 0 : index
    %0 = vector.load %arg1[%c0, %c0_0] : memref<64x64xf32, #tpu.memory_space<vmem>>, vector<64x64xf32>
    %cst = arith.constant dense<0.000000e+00> : vector<64xf32>
    %1 = vector.multi_reduction <add>, %0, %cst [1] : vector<64x64xf32> to vector<64xf32>
    %2 = vector.shape_cast %1 : vector<64xf32> to vector<64x1xf32>
    %cst_1 = arith.constant 6.400000e+01 : f32
    %3 = vector.broadcast %cst_1 : f32 to vector<64x1xf32>
    %4 = arith.divf %2, %3 : vector<64x1xf32>
    %5 = vector.broadcast %4 : vector<64x1xf32> to vector<64x64xf32>
    %6 = arith.subf %0, %5 : vector<64x64xf32>
    %7 = arith.mulf %6, %6 : vector<64x64xf32>
    %cst_2 = arith.constant dense<0.000000e+00> : vector<64xf32>
    %8 = vector.multi_reduction <add>, %7, %cst_2 [1] : vector<64x64xf32> to vector<64xf32>
    %9 = vector.shape_cast %8 : vector<64xf32> to vector<64x1xf32>
    %cst_3 = arith.constant 6.400000e+01 : f32
    %10 = vector.broadcast %cst_3 : f32 to vector<64x1xf32>
    %11 = arith.divf %9, %10 : vector<64x1xf32>
    %12 = vector.broadcast %4 : vector<64x1xf32> to vector<64x64xf32>
    %13 = arith.subf %0, %12 : vector<64x64xf32>
    %cst_4 = arith.constant 9.99999974E-6 : f32
    %14 = vector.broadcast %cst_4 : f32 to vector<64x1xf32>
    %15 = arith.addf %11, %14 : vector<64x1xf32>
    %16 = math.rsqrt %15 : vector<64x1xf32>
    %17 = vector.broadcast %16 : vector<64x1xf32> to vector<64x64xf32>
    %18 = arith.mulf %13, %17 : vector<64x64xf32>
    %c0_5 = arith.constant 0 : index
    %c0_6 = arith.constant 0 : index
    %19 = vector.load %arg2[%c0_5, %c0_6] : memref<1x64xf32, #tpu.memory_space<vmem>>, vector<1x64xf32>
    %20 = vector.broadcast %19 : vector<1x64xf32> to vector<64x64xf32>
    %21 = arith.mulf %18, %20 : vector<64x64xf32>
    %c0_7 = arith.constant 0 : index
    %c0_8 = arith.constant 0 : index
    %22 = vector.load %arg3[%c0_7, %c0_8] : memref<1x64xf32, #tpu.memory_space<vmem>>, vector<1x64xf32>
    %23 = vector.broadcast %22 : vector<1x64xf32> to vector<64x64xf32>
    %24 = arith.addf %21, %23 : vector<64x64xf32>
    %c0_9 = arith.constant 0 : index
    %c0_10 = arith.constant 0 : index
    %25 = vector.load %arg4[%c0_9, %c0_10] : memref<64x64xf32, #tpu.memory_space<vmem>>, vector<64x64xf32>
    tpu.vector_store %arg4[%c0_9, %c0_10], %24 {strides = array<i32>} : memref<64x64xf32, #tpu.memory_space<vmem>>, vector<64x64xf32>,
    return
  }
  func.func @transform_0(%arg0: i32) -> (i32, i32) {
    %c0_i32 = arith.constant 0 : i32
    %c0_i32_0 = arith.constant 0 : i32
    return %arg0, %c0_i32 : i32, i32
  }
  func.func @transform_1(%arg0: i32) -> (i32, i32) {
    %c0_i32 = arith.constant 0 : i32
    %c0_i32_0 = arith.constant 0 : i32
    %c0_i32_1 = arith.constant 0 : i32
    return %c0_i32, %c0_i32_0 : i32, i32
  }
  func.func @transform_2(%arg0: i32) -> (i32, i32) {
    %c0_i32 = arith.constant 0 : i32
    %c0_i32_0 = arith.constant 0 : i32
    %c0_i32_1 = arith.constant 0 : i32
    return %c0_i32, %c0_i32_0 : i32, i32
  }
  func.func @transform_3(%arg0: i32) -> (i32, i32) {
    %c0_i32 = arith.constant 0 : i32
    %c0_i32_0 = arith.constant 0 : i32
    return %arg0, %c0_i32 : i32, i32
  }
}

</mosaic_0001>

<bundles_post_ra>
// kernel: tpu_custom_call.1
= control target key start
LH: loop header
LB: loop body
LE: loop exit
PB: predicated region body
PF: predicated region fallthrough
CT: control target
= control target key end

     0   :  { %8 = vsyncpa [#allocation3], 0  ;;  %s570_s0 = inlined_call_operand.hbm [shape: f32[64,64], index: 0, kind: input, shape index: {}]   ;;  %s571_s1 = inlined_call_operand.hbm [shape: f32[1,64], index: 1, kind: input, shape index: {}]   ;;  %s572_s2 = inlined_call_operand.vmem [shape: f32[1,64], index: 2, kind: input, shape index: {}]   ;;  %s573_s3 = inlined_call_operand.hbm [shape: f32[64,64], index: 3, kind: output, shape index: {}]  }
   0x1   :  { %9 = vsyncpa [#allocation6], 0 }
   0x2   :  { %10 = vsyncpa [#allocation4], 0  ;;  %s15_s14 = sshll.u32 %s570_s0, 4  ;;  %s393_s15 = smov [#allocation2]   ;;  %s16_s14 = int_to_ptr.hbm [resolvable:$true] %s15_s14 }
   0x3   :  { %s17_s16 = sshll.u32 %s393_s15, 4  ;;  %s29_s19 = sshll.u32 %s571_s1, 4  ;;  %s18_s16 = int_to_ptr.vmem [resolvable:$true] %s17_s16  ;;  %s30_s19 = int_to_ptr.hbm [resolvable:$true] %s29_s19 }
   0x4   :  { %s394_s20 = smov 128   ;;  %s395_s21 = smov 8  }
   0x5   :  { %23 = dma.hbm_to_vmem [thread:$0]  %s16_s14, 1024, %s18_s16, [#allocation3], %s394_s20, %s394_s20, %s395_s21  }
   0x6   :  { %s396_s22 = smov [#allocation5]  }
   0x7   :  { %s31_s23 = sshll.u32 %s396_s22, 4  ;;  %s32_s23 = int_to_ptr.vmem [resolvable:$true] %s31_s23 }
   0x8   :  { %34 = dma.hbm_to_vmem [thread:$0]  %s30_s19, 16, %s32_s23, [#allocation6]  }
   0x9   :  { %387 = dma.done.wait [#allocation3], 1024  }
   0xa   :  { %388 = vsyncadd [#allocation3], 4294966272 }
   0xb   :  { %389 = dma.done.wait [#allocation6], 16  }
   0xc   :  { %390 = vsyncadd [#allocation6], 4294967280  ;;  %vm53_vm0 = vcmask 523264   ;;  %v49_v0 = vld [vmem:[#allocation2 + $0x20] sm:$0xff]  ;;  %v47_v1 = vld [vmem:[#allocation2 + $0x10] sm:$0xff]  ;;  %v397_v16 = vmov 64.0  }
   0xd   :  { %v45_v2 = vld [vmem:[#allocation2] sm:$0xff]  ;;  %v66_v3 = vsel %vm53_vm0, %v49_v0, 0.0  ;;  %v60_v4 = vsel %vm53_vm0, %v47_v1, 0.0  ;;  %v50_v6 = vld [vmem:[#allocation2 + $0x28] sm:$0xff]  ;;  %v48_v7 = vld [vmem:[#allocation2 + $0x18] sm:$0xff]  ;;  %297 = vrcp.f32 %v397_v16  ;;  %s275_s27 = sshll.u32 %s573_s3, 4  ;;  %s276_s27 = int_to_ptr.hbm [resolvable:$true] %s275_s27 }
   0xe   :  { %v54_v5 = vsel %vm53_vm0, %v45_v2, 0.0  ;;  %67 = vadd.xlane.f32.xlu2 %v66_v3  ;;  %61 = vadd.xlane.f32.xlu1 %v60_v4  ;;  %v46_v8 = vld [vmem:[#allocation2 + $0x8] sm:$0xff]  ;;  %v69_v9 = vsel %vm53_vm0, %v50_v6, 0.0  ;;  %v63_v10 = vsel %vm53_vm0, %v48_v7, 0.0  ;;  %v52_v12 = vld [vmem:[#allocation2 + $0x38] sm:$0xff]  ;;  %v51_v13 = vld [vmem:[#allocation2 + $0x30] sm:$0xff] }
   0xf   :  { %55 = vadd.xlane.f32.xlu0 %v54_v5  ;;  %v57_v11 = vsel %vm53_vm0, %v46_v8, 0.0  ;;  %v75_v14 = vsel %vm53_vm0, %v52_v12, 0.0  ;;  %v72_v15 = vsel %vm53_vm0, %v51_v13, 0.0 }
  0x13   :  { %v298_v17 = vpop.eup %297 }
  0x14   :  { %v79_v18 = vmul.f32 64.0, %v298_v17  ;;  %vm83_vm1 = vweird.f32 %v298_v17 }
  0x16   :  { %70 = vadd.xlane.f32.xlu2 %v69_v9  ;;  %64 = vadd.xlane.f32.xlu1 %v63_v10  ;;  %v80_v19 = vsub.f32 1.0, %v79_v18 }
  0x17   :  { %58 = vadd.xlane.f32.xlu0 %v57_v11 }
  0x18   :  { %v81_v20 = vmul.f32 %v298_v17, %v80_v19 }
  0x1a   :  { %v82_v21 = vadd.f32 %v298_v17, %v81_v20 }
  0x1c   :  { %v436_v22 = vsel %vm83_vm1, %v298_v17, %v82_v21 }
  0x1e   :  { %76 = vadd.xlane.f32.xlu1 %v75_v14 }
  0x1f   :  { %73 = vadd.xlane.f32.xlu0 %v72_v15 }
  0x81   :  { %v68_v23 = vpop.xlane.xlu2 %67  ;;  %v62_v24 = vpop.xlane.xlu1 %61 }
  0x82   :  { %v87_v25 = vmul.f32 %v436_v22, %v62_v24  ;;  %v56_v26 = vpop.xlane.xlu0 %55  ;;  %v89_v39 = vmul.f32 %v436_v22, %v68_v23 }
  0x83   :  { %v85_v27 = vmul.f32 %v436_v22, %v56_v26 }
  0x84   :  { %v440_v28 = vsub.f32 %v47_v1, %v87_v25  ;;  %v464_v46 = vsub.f32 %v49_v0, %v89_v39 }
  0x85   :  { %v442_v29 = vsub.f32 %v45_v2, %v85_v27 }
  0x86   :  { %v103_v30 = vmul.f32 %v440_v28, %v440_v28  ;;  %v105_v55 = vmul.f32 %v464_v46, %v464_v46 }
  0x87   :  { %v101_v31 = vmul.f32 %v442_v29, %v442_v29 }
  0x88   :  { %v115_v32 = vsel %vm53_vm0, %v103_v30, 0.0  ;;  %v121_v58 = vsel %vm53_vm0, %v105_v55, 0.0 }
  0x89   :  { %v71_v33 = vpop.xlane.xlu2 %70  ;;  %116 = vadd.xlane.f32.xlu1 %v115_v32  ;;  %v65_v34 = vpop.xlane.xlu1 %64  ;;  %v109_v35 = vsel %vm53_vm0, %v101_v31, 0.0 }
  0x8a   :  { %v90_v36 = vmul.f32 %v436_v22, %v71_v33  ;;  %v88_v37 = vmul.f32 %v436_v22, %v65_v34  ;;  %110 = vadd.xlane.f32.xlu2 %v109_v35  ;;  %v59_v38 = vpop.xlane.xlu0 %58 }
  0x8b   :  { %v86_v40 = vmul.f32 %v436_v22, %v59_v38 }
  0x8c   :  { %v454_v41 = vsub.f32 %v50_v6, %v90_v36  ;;  %v456_v42 = vsub.f32 %v48_v7, %v88_v37  ;;  %v501_v37 = vld [vmem:[#allocation5] ss:$0 sm:$0xff] }
  0x8d   :  { %v458_v43 = vsub.f32 %v46_v8, %v86_v40 }
  0x8e   :  { %v106_v44 = vmul.f32 %v454_v41, %v454_v41  ;;  %v104_v45 = vmul.f32 %v456_v42, %v456_v42 }
  0x8f   :  { %v102_v47 = vmul.f32 %v458_v43, %v458_v43 }
  0x90   :  { %v124_v48 = vsel %vm53_vm0, %v106_v44, 0.0  ;;  %v118_v49 = vsel %vm53_vm0, %v104_v45, 0.0 }
  0x91   :  { %125 = vadd.xlane.f32.xlu1 %v124_v48  ;;  %v112_v50 = vsel %vm53_vm0, %v102_v47, 0.0  ;;  %v77_v51 = vpop.xlane.xlu1 %76  ;;  %v511_v48 = vld [vmem:[%s572_s2] ss:$0 sm:$0xff]  ;;  %s398_s2 = smov [#allocation7]  }
  0x92   :  { %119 = vadd.xlane.f32.xlu2 %v118_v49  ;;  %113 = vadd.xlane.f32.xlu0 %v112_v50  ;;  %v74_v52 = vpop.xlane.xlu0 %73  ;;  %v92_v54 = vmul.f32 %v436_v22, %v77_v51  ;;  %s273_s24 = sshll.u32 %s398_s2, 4  ;;  %s274_s24 = int_to_ptr.vmem [resolvable:$true] %s273_s24 }
  0x93   :  { %v91_v53 = vmul.f32 %v436_v22, %v74_v52 }
  0x94   :  { %v477_v57 = vsub.f32 %v52_v12, %v92_v54 }
  0x95   :  { %v475_v56 = vsub.f32 %v51_v13, %v91_v53 }
  0x96   :  { %v108_v61 = vmul.f32 %v477_v57, %v477_v57 }
  0x97   :  { %v107_v59 = vmul.f32 %v475_v56, %v475_v56 }
  0x98   :  { %v130_v62 = vsel %vm53_vm0, %v108_v61, 0.0 }
  0x99   :  { %v127_v60 = vsel %vm53_vm0, %v107_v59, 0.0 }
  0x9a   :  { %122 = vadd.xlane.f32.xlu0 %v121_v58  ;;  %128 = vadd.xlane.f32.xlu2 %v127_v60 }
  0xa2   :  { %131 = vadd.xlane.f32.xlu0 %v130_v62 }
  0xfc   :  { %v117_v63 = vpop.xlane.xlu1 %116 }
  0xfd   :  { %v135_v0 = vmul.f32 %v117_v63, %v436_v22  ;;  %v111_v1 = vpop.xlane.xlu2 %110 }
  0xfe   :  { %v133_v2 = vmul.f32 %v111_v1, %v436_v22 }
  0xff   :  { %v143_v3 = vadd.f32 1e-05, %v135_v0 }
 0x100   :  { %v141_v4 = vadd.f32 1e-05, %v133_v2 }
 0x101   :  { %299 = vrsqrt.f32 %v143_v3  ;;  %vm175_vm2 = vweird.f32 %v143_v3 }
 0x102   :  { %301 = vrsqrt.f32 %v141_v4  ;;  %vm155_vm6 = vweird.f32 %v141_v4 }
 0x104   :  { %v126_v5 = vpop.xlane.xlu1 %125 }
 0x105   :  { %v138_v6 = vmul.f32 %v126_v5, %v436_v22  ;;  %v120_v7 = vpop.xlane.xlu2 %119  ;;  %v114_v8 = vpop.xlane.xlu0 %113 }
 0x106   :  { %v136_v9 = vmul.f32 %v120_v7, %v436_v22  ;;  %v134_v10 = vmul.f32 %v114_v8, %v436_v22 }
 0x107   :  { %v300_v11 = vpop.eup %299  ;;  %v146_v12 = vadd.f32 1e-05, %v138_v6 }
 0x108   :  { %v302_v13 = vpop.eup %301  ;;  %v170_v14 = vmul.f32 %v300_v11, %v143_v3  ;;  %v491_v15 = vadd.f32 1e-05, %v136_v9  ;;  %v493_v16 = vadd.f32 1e-05, %v134_v10  ;;  %vm176_vm3 = vweird.f32 %v300_v11 }
 0x109   :  { %v150_v17 = vmul.f32 %v302_v13, %v141_v4  ;;  %303 = vrsqrt.f32 %v146_v12  ;;  %vm156_vm4 = vweird.f32 %v302_v13  ;;  %vm177_vm5 = vmor %vm175_vm2, %vm176_vm3  ;;  %vm205_vm8 = vweird.f32 %v146_v12 }
 0x10a   :  { %v171_v18 = vmul.f32 %v300_v11, %v170_v14  ;;  %305 = vrsqrt.f32 %v491_v15  ;;  %vm157_vm7 = vmor %vm155_vm6, %vm156_vm4  ;;  %vm185_vm10 = vweird.f32 %v491_v15  ;;  %vm165_vm15 = vweird.f32 %v493_v16 }
 0x10b   :  { %v151_v19 = vmul.f32 %v302_v13, %v150_v17  ;;  %307 = vrsqrt.f32 %v493_v16 }
 0x10c   :  { %v172_v20 = vmul.f32 0.5, %v171_v18 }
 0x10d   :  { %v152_v21 = vmul.f32 0.5, %v151_v19  ;;  %v129_v23 = vpop.xlane.xlu2 %128  ;;  %v123_v24 = vpop.xlane.xlu0 %122 }
 0x10e   :  { %v173_v25 = vsub.f32 1.5, %v172_v20  ;;  %v139_v26 = vmul.f32 %v129_v23, %v436_v22  ;;  %v137_v27 = vmul.f32 %v123_v24, %v436_v22 }
 0x10f   :  { %v304_v30 = vpop.eup %303  ;;  %v153_v31 = vsub.f32 1.5, %v152_v21 }
 0x110   :  { %v306_v32 = vpop.eup %305  ;;  %v174_v33 = vmul.f32 %v300_v11, %v173_v25  ;;  %v200_v34 = vmul.f32 %v304_v30, %v146_v12  ;;  %v499_v35 = vadd.f32 1e-05, %v139_v26  ;;  %v505_v40 = vadd.f32 1e-05, %v137_v27 }
 0x111   :  { %v308_v36 = vpop.eup %307  ;;  %v154_v38 = vmul.f32 %v302_v13, %v153_v31  ;;  %v180_v39 = vmul.f32 %v306_v32, %v491_v15  ;;  %vm206_vm9 = vweird.f32 %v304_v30  ;;  %vm186_vm12 = vweird.f32 %v306_v32 }
 0x112   :  { %v178_v44 = vsel %vm177_vm5, %v300_v11, %v174_v33  ;;  %v201_v45 = vmul.f32 %v304_v30, %v200_v34  ;;  %v160_v47 = vmul.f32 %v308_v36, %v493_v16  ;;  %309 = vrsqrt.f32 %v499_v35  ;;  %vm523_vm11 = vmor %vm205_vm8, %vm206_vm9 }
 0x113   :  { %v231_v49 = vmul.f32 %v178_v44, %v440_v28  ;;  %v158_v50 = vsel %vm157_vm7, %v302_v13, %v154_v38  ;;  %v181_v51 = vmul.f32 %v306_v32, %v180_v39  ;;  %311 = vrsqrt.f32 %v505_v40  ;;  %vm187_vm14 = vmor %vm185_vm10, %vm186_vm12 }
 0x114   :  { %v229_v52 = vmul.f32 %v158_v50, %v442_v29  ;;  %v202_v53 = vmul.f32 0.5, %v201_v45  ;;  %v161_v54 = vmul.f32 %v308_v36, %v160_v47  ;;  %vm166_vm13 = vweird.f32 %v308_v36 }
 0x115   :  { %v243_v55 = vmul.f32 %v501_v37, %v231_v49  ;;  %v182_v58 = vmul.f32 0.5, %v181_v51  ;;  %v132_v59 = vpop.xlane.xlu0 %131  ;;  %vm167_vm1 = vmor %vm165_vm15, %vm166_vm13  ;;  %vm215_vm2 = vweird.f32 %v499_v35  ;;  %vm195_vm6 = vweird.f32 %v505_v40 }
 0x116   :  { %v241_v60 = vmul.f32 %v501_v37, %v229_v52  ;;  %v203_v28 = vsub.f32 1.5, %v202_v53  ;;  %v162_v61 = vmul.f32 0.5, %v161_v54  ;;  %v140_v62 = vmul.f32 %v132_v59, %v436_v22 }
 0x117   :  { %v255_v63 = vadd.f32 %v511_v48, %v243_v55  ;;  %v183_v0 = vsub.f32 1.5, %v182_v58 }
 0x118   :  { %v253_v1 = vadd.f32 %v511_v48, %v241_v60  ;;  %v204_v2 = vmul.f32 %v304_v30, %v203_v28  ;;  %v163_v3 = vsub.f32 1.5, %v162_v61  ;;  %v148_v4 = vadd.f32 1e-05, %v140_v62  ;;  %v310_v5 = vpop.eup %309 }
 0x119   :  { %263 = vst.msk [vmem:[#allocation7 + $0x10] sm:$0xff] %vm53_vm0, %v255_v63  ;;  %v184_v6 = vmul.f32 %v306_v32, %v183_v0  ;;  %v210_v8 = vmul.f32 %v310_v5, %v499_v35  ;;  %v312_v9 = vpop.eup %311  ;;  %vm216_vm3 = vweird.f32 %v310_v5 }
 0x11a   :  { %261 = vst.msk [vmem:[#allocation7] sm:$0xff] %vm53_vm0, %v253_v1  ;;  %v208_v22 = vsel %vm523_vm11, %v304_v30, %v204_v2  ;;  %v164_v7 = vmul.f32 %v308_v36, %v163_v3  ;;  %313 = vrsqrt.f32 %v148_v4  ;;  %v190_v17 = vmul.f32 %v312_v9, %v505_v40  ;;  %vm217_vm5 = vmor %vm215_vm2, %vm216_vm3 }
 0x11b   :  { %v234_v10 = vmul.f32 %v208_v22, %v454_v41  ;;  %v188_v11 = vsel %vm187_vm14, %v306_v32, %v184_v6  ;;  %v211_v14 = vmul.f32 %v310_v5, %v210_v8  ;;  %vm196_vm4 = vweird.f32 %v312_v9 }
 0x11c   :  { %v232_v12 = vmul.f32 %v188_v11, %v456_v42  ;;  %v168_v13 = vsel %vm167_vm1, %v308_v36, %v164_v7  ;;  %v191_v20 = vmul.f32 %v312_v9, %v190_v17  ;;  %vm197_vm7 = vmor %vm195_vm6, %vm196_vm4  ;;  %vm225_vm9 = vweird.f32 %v148_v4 }
 0x11d   :  { %v246_v15 = vmul.f32 %v501_v37, %v234_v10  ;;  %v230_v18 = vmul.f32 %v168_v13, %v458_v43  ;;  %v212_v19 = vmul.f32 0.5, %v211_v14 }
 0x11e   :  { %v244_v16 = vmul.f32 %v501_v37, %v232_v12  ;;  %v192_v24 = vmul.f32 0.5, %v191_v20 }
 0x11f   :  { %v258_v41 = vadd.f32 %v511_v48, %v246_v15  ;;  %v242_v21 = vmul.f32 %v501_v37, %v230_v18  ;;  %v213_v23 = vsub.f32 1.5, %v212_v19 }
 0x120   :  { %v256_v42 = vadd.f32 %v511_v48, %v244_v16  ;;  %v314_v25 = vpop.eup %313  ;;  %v193_v27 = vsub.f32 1.5, %v192_v24 }
 0x121   :  { %266 = vst.msk [vmem:[#allocation7 + $0x28] sm:$0xff] %vm53_vm0, %v258_v41  ;;  %v254_v43 = vadd.f32 %v511_v48, %v242_v21  ;;  %v214_v26 = vmul.f32 %v310_v5, %v213_v23  ;;  %v220_v30 = vmul.f32 %v314_v25, %v148_v4  ;;  %vm226_vm8 = vweird.f32 %v314_v25 }
 0x122   :  { %264 = vst.msk [vmem:[#allocation7 + $0x18] sm:$0xff] %vm53_vm0, %v256_v42  ;;  %v194_v32 = vmul.f32 %v312_v9, %v193_v27  ;;  %vm227_vm10 = vmor %vm225_vm9, %vm226_vm8 }
 0x123   :  { %262 = vst.msk [vmem:[#allocation7 + $0x8] sm:$0xff] %vm53_vm0, %v254_v43  ;;  %v218_v31 = vsel %vm217_vm5, %v310_v5, %v214_v26  ;;  %v221_v33 = vmul.f32 %v314_v25, %v220_v30 }
 0x124   :  { %v235_v34 = vmul.f32 %v218_v31, %v475_v56  ;;  %v198_v35 = vsel %vm197_vm7, %v312_v9, %v194_v32 }
 0x125   :  { %v222_v36 = vmul.f32 0.5, %v221_v33  ;;  %v233_v39 = vmul.f32 %v198_v35, %v464_v46 }
 0x126   :  { %v247_v38 = vmul.f32 %v501_v37, %v235_v34 }
 0x127   :  { %v223_v44 = vsub.f32 1.5, %v222_v36  ;;  %v245_v47 = vmul.f32 %v501_v37, %v233_v39 }
 0x128   :  { %v259_v45 = vadd.f32 %v511_v48, %v247_v38 }
 0x129   :  { %v224_v49 = vmul.f32 %v314_v25, %v223_v44  ;;  %v257_v40 = vadd.f32 %v511_v48, %v245_v47 }
 0x12a   :  { %267 = vst.msk [vmem:[#allocation7 + $0x30] sm:$0xff] %vm53_vm0, %v259_v45 }
 0x12b   :  { %v228_v56 = vsel %vm227_vm10, %v314_v25, %v224_v49  ;;  %265 = vst.msk [vmem:[#allocation7 + $0x20] sm:$0xff] %vm53_vm0, %v257_v40 }
 0x12c   :  { %v236_v50 = vmul.f32 %v228_v56, %v477_v57 }
 0x12e   :  { %v248_v46 = vmul.f32 %v501_v37, %v236_v50 }
 0x130   :  { %v260_v51 = vadd.f32 %v511_v48, %v248_v46 }
 0x132   :  { %268 = vst.msk [vmem:[#allocation7 + $0x38] sm:$0xff] %vm53_vm0, %v260_v51 }
 0x133   :  { %281 = dma.vmem_to_hbm [thread:$0]  %s274_s24, 1024, %s276_s27, [#allocation4], %s394_s20, %s394_s20, %s395_s21  }
 0x134   :  { %391 = dma.done.wait [#allocation4], 1024  }
 0x135   :  { %392 = vsyncadd [#allocation4], 4294966272 }
 0x136   :  { %286 = vsyncpa [#allocation3], 1 }
 0x137   :  { %287 = vsyncpa [#allocation6], 1 }
 0x138   :  { %288 = vsyncpa [#allocation4], 1 }

</bundles_post_ra>
